<compile_context>
chip_gen: v5e
topology: v5e:2x2
jax: 0.10.0
libtpu: 0.0.40
codegen_flags: <defaults>
</compile_context>

<pallas_src>
import math
from functools import partial

import jax
import jax.numpy as jnp
from jax.experimental import pallas as pl
from jax.experimental.pallas import tpu as pltpu


# ----------------------------- kernels ------------------------------------ #

def _torgb_kernel(mw_ref, bias_ref, x_ref, out_ref, *, compute_dtype):
    # mw_ref   : (3, C)    compute_dtype modulated 1x1-conv weight (this batch)
    # bias_ref : (3, 1)    f32 output bias
    # x_ref    : (C, THW)  native-dtype feature tile (HW on lanes)
    # out_ref  : (3, THW)  f32
    x = x_ref[...].astype(compute_dtype)          # in-kernel cast (free: VPU idle)
    acc = jnp.dot(mw_ref[...], x, preferred_element_type=jnp.float32)
    out_ref[...] = acc + bias_ref[...]


def _torgb_skip_kernel(mw_ref, bias_ref, x_ref, skip_ref, out_ref, *,
                       compute_dtype):
    # Same as above with the skip add fused into the epilogue.
    x = x_ref[...].astype(compute_dtype)
    acc = jnp.dot(mw_ref[...], x, preferred_element_type=jnp.float32)
    out_ref[...] = acc + bias_ref[...] + skip_ref[...].astype(jnp.float32)


# ----------------------------- wrapper ------------------------------------ #

def _pick_tile(hw, c, x_itemsize, fuse_skip):
    """Pick a lane-dense spatial tile size.

    Accounts for the double-buffered x tile (native dtype!), f32 output tile,
    and (optionally) the f32 skip tile.  Budget 16 MiB, well under the 32 MiB
    scoped VMEM limit on every generation (v7x physical VMEM is 64 MiB/TC).
    """
    bytes_per_lane = 2 * (c * x_itemsize           # x tile, double-buffered
                          + 3 * 4                  # f32 output tile
                          + (3 * 4 if fuse_skip else 0))
    budget = 16 * 1024 * 1024
    thw = budget // max(bytes_per_lane, 1)
    thw = max(128, min(16384, (thw // 128) * 128))
    if hw <= thw:
        # Single full-extent block: exempt from the 128-divisibility rule and
        # avoids any ragged / masked stores.
        return hw, 1
    # Multiple blocks: thw a multiple of 128, last block ragged (masked store).
    n_hw = pl.cdiv(hw, thw)
    thw = pl.cdiv(pl.cdiv(hw, n_hw), 128) * 128    # re-balance padding waste
    n_hw = pl.cdiv(hw, thw)
    return thw, n_hw


def torgb_forward(x, style, params, skip=None, upsample=True,
                  compute_dtype=jnp.bfloat16):
    """ToRGB forward.

    Args:
      x:     (B, C, H, W) features (NCHW, like PyTorch)
      style: (B, S) style vectors
      params: dict with
        'mod_w'  : (C, S)  modulation.weight
        'mod_b'  : (C,)    modulation.bias
        'conv_w' : (3, C)  ModulatedConv2d weight (1, 3, C, 1, 1) squeezed
        'bias'   : (3,)    ToRGB bias (1, 3, 1, 1) squeezed
      skip:  optional (B, 3, Hs, Ws) skip tensor
      compute_dtype: dtype fed to the MXU (bf16: f32 accumulate; rel err ~1e-3
        vs the f32 PyTorch reference).
    Returns:
      (B, 3, H, W) float32 RGB output.
    """
    B, C, H, W = x.shape
    HW = H * W

    # --- tiny modulation path, hoisted out of the streaming kernel ----------
    style_f = style.astype(jnp.float32)
    smod = style_f @ params["mod_w"].T.astype(jnp.float32) \
        + params["mod_b"].astype(jnp.float32)                       # (B, C)
    mw = params["conv_w"].astype(jnp.float32)[None, :, :] * smod[:, None, :]
    mw = mw.astype(compute_dtype)                                   # (B, 3, C)
    bias = params["bias"].reshape(3, 1).astype(jnp.float32)         # (3, 1)

    # --- optional skip: upsample (glue, outside the kernel), then fuse add --
    fuse_skip = skip is not None
    if fuse_skip and upsample:
        # bilinear, half-pixel centers == F.interpolate(align_corners=False)
        # TODO(synk): canonical StyleGAN2 skip upsample is an upfirdn2d FIR;
        # this matches the given PyTorch module (bilinear interpolate).
        Bs, Cs, Hs, Ws = skip.shape
        skip = jax.image.resize(skip.astype(jnp.float32),
                                (Bs, Cs, 2 * Hs, 2 * Ws), method="bilinear")
    if fuse_skip:
        assert skip.shape == (B, 3, H, W), "skip must match output resolution"

    # --- spatial tiling (no padding; ragged last block is masked on store) --
    x_itemsize = jnp.dtype(x.dtype).itemsize
    thw, n_hw = _pick_tile(HW, C, x_itemsize, fuse_skip)

    x_flat = x.reshape(B, C, HW)                  # native dtype, no astype copy

    in_specs = [
        pl.BlockSpec((pl.Squeezed(), 3, C), lambda hw, b: (b, 0, 0)),     # mw
        pl.BlockSpec((3, 1), lambda hw, b: (0, 0)),                       # bias
        pl.BlockSpec((pl.Squeezed(), C, thw), lambda hw, b: (b, 0, hw)),  # x
    ]
    inputs = [mw, bias, x_flat]
    kernel = partial(_torgb_kernel, compute_dtype=compute_dtype)

    skip_bytes = 0
    if fuse_skip:
        skip_flat = skip.reshape(B, 3, HW)        # already f32 from resize
        in_specs.append(
            pl.BlockSpec((pl.Squeezed(), 3, thw), lambda hw, b: (b, 0, hw)))
        inputs.append(skip_flat)
        kernel = partial(_torgb_skip_kernel, compute_dtype=compute_dtype)
        skip_bytes = B * 3 * HW * jnp.dtype(skip_flat.dtype).itemsize

    cost = pl.CostEstimate(
        flops=2 * 3 * C * HW * B,
        transcendentals=0,
        bytes_accessed=(B * C * HW * x_itemsize                     # x read
                        + B * 3 * HW * 4                            # out write
                        + skip_bytes                                # skip read
                        + B * 3 * C * jnp.dtype(compute_dtype).itemsize
                        + 3 * 4),
    )

    out_flat = pl.pallas_call(
        kernel,
        out_shape=jax.ShapeDtypeStruct((B, 3, HW), jnp.float32),
        grid_spec=pltpu.PrefetchScalarGridSpec(
            num_scalar_prefetch=0,
            # Spatial axis first so megacore (v7x) shards HW even when B == 1.
            grid=(n_hw, B),
            in_specs=in_specs,
            out_specs=pl.BlockSpec((pl.Squeezed(), 3, thw),
                                   lambda hw, b: (b, 0, hw)),
        ),
        compiler_params=pltpu.CompilerParams(
            dimension_semantics=("parallel", "parallel"),
            # Explicit override: v5e's scoped-VMEM default is 16 MiB.
            vmem_limit_bytes=32 * 1024 * 1024,
        ),
        cost_estimate=cost,
    )(*inputs)

    return out_flat.reshape(B, 3, H, W)


# ----------------------------- init & reference ---------------------------- #

def init_torgb_params(key, in_channels, num_style_feat):
    """Deterministic parameter init matching the PyTorch module's __init__."""
    k1, k2 = jax.random.split(key)
    # modulation: nn.Linear(num_style_feat, in_channels), kaiming_uniform
    # (fan_in=num_style_feat, gain=1) => U(-b, b), b = sqrt(3 / fan_in); bias 0.
    bound = math.sqrt(3.0 / num_style_feat)
    mod_w = jax.random.uniform(k1, (in_channels, num_style_feat),
                               minval=-bound, maxval=bound, dtype=jnp.float32)
    mod_b = jnp.zeros((in_channels,), jnp.float32)
    # conv weight: randn(1, 3, C, 1, 1) / sqrt(C * 1**2)   (kernel_size = 1)
    conv_w = (jax.random.normal(k2, (3, in_channels), dtype=jnp.float32)
              / math.sqrt(in_channels * 1 ** 2))
    # ToRGB bias: zeros(1, 3, 1, 1)
    bias = jnp.zeros((3,), jnp.float32)
    return {"mod_w": mod_w, "mod_b": mod_b, "conv_w": conv_w, "bias": bias}


def _reference_torgb(x, style, params, skip=None, upsample=True,
                     compute_dtype=jnp.bfloat16):
    """Pure-JAX reference with matching dtype policy (bf16 matmul, f32 acc)."""
    smod = style @ params["mod_w"].T + params["mod_b"]               # (B, C)
    mw = (params["conv_w"][None, :, :] * smod[:, None, :]).astype(compute_dtype)
    out = jnp.einsum("boc,bchw->bohw", mw, x.astype(compute_dtype),
                     preferred_element_type=jnp.float32)             # (B,3,H,W)
    out = out + params["bias"].reshape(1, 3, 1, 1)
    if skip is not None:
        if upsample:
            Bs, Cs, Hs, Ws = skip.shape
            skip = jax.image.resize(skip.astype(jnp.float32),
                                    (Bs, Cs, 2 * Hs, 2 * Ws), method="bilinear")
        out = out + skip
    return out


# ----------------------------- test ---------------------------------------- #

if __name__ == "__main__":
    key = jax.random.PRNGKey(0)
    kp, kx, ks, kk = jax.random.split(key, 4)

    B, C, H, W = 2, 4, 16, 16
    S = 8  # num_style_feat

    params = init_torgb_params(kp, in_channels=C, num_style_feat=S)
    x = jax.random.normal(kx, (B, C, H, W), dtype=jnp.float32)
    style = jax.random.normal(ks, (B, S), dtype=jnp.float32)
    skip = jax.random.normal(kk, (B, 3, H // 2, W // 2), dtype=jnp.float32)

    # 1) no-skip path
    out = torgb_forward(x, style, params, skip=None)
    out = jax.block_until_ready(out)
    ref = _reference_torgb(x, style, params, skip=None)
    assert out.shape == (B, 3, H, W)
    assert jnp.allclose(out, ref, atol=1e-3, rtol=1e-3), "mismatch (no skip)"

    # 2) fused skip (+ bilinear upsample in wrapper) path
    out_s = torgb_forward(x, style, params, skip=skip, upsample=True)
    out_s = jax.block_until_ready(out_s)
    ref_s = _reference_torgb(x, style, params, skip=skip, upsample=True)
    assert out_s.shape == (B, 3, H, W)
    assert jnp.allclose(out_s, ref_s, atol=1e-3, rtol=1e-3), "mismatch (skip)"

    print("KERNEL_OK")
</pallas_src>

<mosaic_0001>
module attributes {stable_mosaic.version = 11 : i64} {
  func.func @_torgb_kernel(%arg0: i32, %arg1: i32, %arg2: memref<1x3x4xbf16, #tpu.memory_space<vmem>>, %arg3: memref<3x1xf32, #tpu.memory_space<vmem>>, %arg4: memref<1x4x256xf32, #tpu.memory_space<vmem>>, %arg5: memref<1x3x256xf32, #tpu.memory_space<vmem>>) attributes {dimension_semantics = [#tpu.dimension_semantics<parallel>, #tpu.dimension_semantics<parallel>], iteration_bounds = array<i64: 1, 2>, scalar_prefetch = 0 : i64, scratch_operands = 0 : i64, tpu.core_type = #tpu.core_type<tc>, window_params = [{transform_indices = @transform_0, window_bounds = array<i64: 1, 3, 4>}, {pipeline_mode = #tpu.pipeline_mode<synchronous>, transform_indices = @transform_1, window_bounds = array<i64: 3, 1>}, {transform_indices = @transform_2, window_bounds = array<i64: 1, 4, 256>}, {transform_indices = @transform_3, window_bounds = array<i64: 1, 3, 256>}]} {
    %c0 = arith.constant 0 : index
    %c0_0 = arith.constant 0 : index
    %c0_1 = arith.constant 0 : index
    %0 = vector.load %arg4[%c0, %c0_0, %c0_1] : memref<1x4x256xf32, #tpu.memory_space<vmem>>, vector<1x4x256xf32>
    %1 = vector.shape_cast %0 : vector<1x4x256xf32> to vector<4x256xf32>
    %2 = arith.truncf %1 : vector<4x256xf32> to vector<4x256xbf16>
    %c0_2 = arith.constant 0 : index
    %c0_3 = arith.constant 0 : index
    %c0_4 = arith.constant 0 : index
    %3 = vector.load %arg2[%c0_2, %c0_3, %c0_4] : memref<1x3x4xbf16, #tpu.memory_space<vmem>>, vector<1x3x4xbf16>
    %4 = vector.shape_cast %3 : vector<1x3x4xbf16> to vector<3x4xbf16>
    %cst = arith.constant dense<0.000000e+00> : vector<3x256xf32>
    %5 = tpu.matmul %4, %2, %cst {dimension_numbers = #tpu.dot_dimension_numbers<[1], [0], [0], [1], [0, 0, 1, 1], [], []>} : vector<3x4xbf16>, vector<4x256xbf16>, vector<3x256xf32> -> vector<3x256xf32>
    %c0_5 = arith.constant 0 : index
    %c0_6 = arith.constant 0 : index
    %6 = vector.load %arg3[%c0_5, %c0_6] : memref<3x1xf32, #tpu.memory_space<vmem>>, vector<3x1xf32>
    %7 = vector.broadcast %6 : vector<3x1xf32> to vector<3x256xf32>
    %8 = arith.addf %5, %7 : vector<3x256xf32>
    %c0_7 = arith.constant 0 : index
    %c0_8 = arith.constant 0 : index
    %c0_9 = arith.constant 0 : index
    %9 = vector.load %arg5[%c0_7, %c0_8, %c0_9] : memref<1x3x256xf32, #tpu.memory_space<vmem>>, vector<1x3x256xf32>
    %10 = vector.shape_cast %9 : vector<1x3x256xf32> to vector<3x256xf32>
    %11 = vector.shape_cast %8 : vector<3x256xf32> to vector<1x3x256xf32>
    tpu.vector_store %arg5[%c0_7, %c0_8, %c0_9], %11 {strides = array<i32>} : memref<1x3x256xf32, #tpu.memory_space<vmem>>, vector<1x3x256xf32>,
    return
  }
  func.func @transform_0(%arg0: i32, %arg1: i32) -> (i32, i32, i32) {
    %c0_i32 = arith.constant 0 : i32
    %c0_i32_0 = arith.constant 0 : i32
    %c0_i32_1 = arith.constant 0 : i32
    return %arg1, %c0_i32, %c0_i32_0 : i32, i32, i32
  }
  func.func @transform_1(%arg0: i32, %arg1: i32) -> (i32, i32) {
    %c0_i32 = arith.constant 0 : i32
    %c0_i32_0 = arith.constant 0 : i32
    %c0_i32_1 = arith.constant 0 : i32
    return %c0_i32, %c0_i32_0 : i32, i32
  }
  func.func @transform_2(%arg0: i32, %arg1: i32) -> (i32, i32, i32) {
    %c0_i32 = arith.constant 0 : i32
    %c0_i32_0 = arith.constant 0 : i32
    return %arg1, %c0_i32, %arg0 : i32, i32, i32
  }
  func.func @transform_3(%arg0: i32, %arg1: i32) -> (i32, i32, i32) {
    %c0_i32 = arith.constant 0 : i32
    %c0_i32_0 = arith.constant 0 : i32
    return %arg1, %c0_i32, %arg0 : i32, i32, i32
  }
}

</mosaic_0001>

<bundles_post_ra>
// kernel: tpu_custom_call.1
= control target key start
LH: loop header
LB: loop body
LE: loop exit
PB: predicated region body
PF: predicated region fallthrough
CT: control target
= control target key end

     0   :  { %8 = vsyncpa [#allocation3], 0  ;;  %s676_s0 = inlined_call_operand.vmem [shape: bf16[2,3,4], index: 0, kind: input, shape index: {}]   ;;  %s677_s1 = inlined_call_operand.vmem [shape: f32[3,1], index: 1, kind: input, shape index: {}]   ;;  %s678_s2 = inlined_call_operand.hbm [shape: f32[2,4,256], index: 2, kind: input, shape index: {}]   ;;  %s679_s3 = inlined_call_operand.vmem [shape: f32[2,3,256], index: 3, kind: output, shape index: {}]  }
   0x1   :  { %10 = vsyncpa [#allocation3 + $0x1], 0  ;;  %s582_s12 = smov 0   ;;  %s584_s13 = smov 0  }
   0x2   :  { %s586_s14 = smov 0   ;;  %s588_s15 = smov 0  }
   0x3   :  { %s590_s16 = smov 0   ;;  %s592_s17 = smov 0  }
   0x4 LB: > { %s404_s18 = sadd.s32 4294967295, %s559_s17   ;;  %s25_s19 = sadd.s32 1, %s555_s16  ;;  %s559_s17 = sphi %s592_s17, %s16_s17   ;;  %s555_s16 = sphi %s590_s16, %s686_s16   ;;  %s551_s15 = sphi %s588_s15, %s685_s15   ;;  %s547_s14 = sphi %s586_s14, %s684_s14   ;;  %s543_s13 = sphi %s584_s13, %s683_s13   ;;  %s539_s12 = sphi %s582_s12, %s682_s12  }
   0x5   : > { %p26_p0 = scmp.ge.s32.totalorder %s25_s19, 2  ;;  %s84_s20 = sadd.s32 1, %s547_s14 }
   0x6   : > { %p91_p1 = scmp.ne.s32.totalorder %s547_s14, %s543_s13  ;;  %p92_p2 = scmp.eq.s32.totalorder %s559_s17, 0 }
   0x7   : > { %s688_s19 = smov (%p26_p0, %s25_s19), 0  ;;  %p97_p4 = scmp.ne.s32.totalorder %s543_s13, %s539_s12 }
   0x8   : > { %p618_p3 = por %p92_p2, %p91_p1  ;;  %s79_s22 = ssub.s32 %s555_s16, %s688_s19 }
   0x9   : > { %p98_p5 = scmp.eq.s32.totalorder %s404_s18, 0  ;;  %p82_p6 = scmp.eq.s32.totalorder %s79_s22, 0 }
   0xa   : > { %p428_p8 = scmp.lt.s32.totalorder %s559_s17, 2  ;;  %s159_s25 = sand.u32 1, %s547_s14  }
   0xb   : > { %p625_p7 = por %p98_p5, %p97_p4  ;;  %s420_s26 = sshll.u32 %s555_s16, 3 }
   0xc   : > { %s631_s24 = scalar_select %p82_p6, %s547_s14, %s84_s20  }
   0xd   : > { %s408_s27 = sshll.u32 %s159_s25, 3  ;;  %s170_s30 = scalar_lea.hbm %s678_s2, %s420_s26 }
   0xe   : > { %s172_s4 = sshll.u32 %s170_s30, 4  ;;  %s163_s5 = scalar_lea.vmem [#allocation2], %s408_s27  ;;  %s173_s4 = int_to_ptr.hbm [resolvable:$true] %s172_s4 }
   0xf   : > { %s174_s6 = sshll.u32 %s163_s5, 4  ;;  %p425_p9 = pnand %p428_p8, %p618_p3  ;;  %s175_s6 = int_to_ptr.vmem [resolvable:$true] %s174_s6 }
  0x10   : > { %p411_p10 = scmp.ge.s32.totalorder %s559_s17, 1  ;;  %p179_p11 = scmp.lt.s32.totalorder %s559_s17, 3 }
  0x11   : > { %s160_s7 = scalar_lea.sflag [#allocation3], %s159_s25 }
  0x12   : > { %427 = dma.hbm_to_vmem [thread:$0]  (!%p425_p9), %s173_s4, 128, %s175_s6, %s160_s7  }
  0x13   : > { %p180_p12 = pnand %p411_p10, %p179_p11 }
  0x14   : > { %s185_s8 = sand.u32 (!%p180_p12), 1, %s543_s13  }
  0x15   : > { %183 = sbr.rel (%p180_p12) target bundleno = 176 (0xb0), region = 32  ;;  %s412_s9 = sshll.u32 (!%p180_p12), %s185_s8, 3 }
  0x16   : > { %s186_s10 = scalar_lea.sflag (!%p180_p12), [#allocation3], %s185_s8  ;;  %s189_s11 = scalar_lea.vmem (!%p180_p12), [#allocation2], %s412_s9 }
  0x1a   : > { %534 = dma.done.wait (%p625_p7), %s186_s10, 128  }
  0x1b   : > { %536 = vsyncadd (%p625_p7), %s186_s10, 4294967168  ;;  %v561_v0 = vmov 0   ;;  %p221_p13 = scmp.lt.s32.totalorder %s551_s15, 1  ;;  %v237_v1 = vld [vmem:[%s189_s11] sm:$0xff]  ;;  %v247_v2 = vld [vmem:[%s677_s1] sm:$0x7] }
  0x1c   : > { %478 = vset.pattern.permute.xlu0 %v561_v0  ;;  %239 = vst [vmem:[#allocation1] ss:$2 sm:$0xff] %v237_v1  ;;  %vm257_vm0 = vcmask 1041408   ;;  %vm253_vm1 = vcmask 31744   ;;  %vm293_vm2 = vcmask 1043456  }
  0x1d   : > { %250 = vperm.xlu0 %478, %v247_v2   ;;  %s690_s15 = smov (!%p221_p13, %s551_s15), 1 }
  0x1e   : > { %s413_s20 = sshll.u32 %s690_s15, 1  ;;  %s421_s25 = sshll.u32 %s690_s15, 3 }
  0x1f   : > { %s224_s23 = scalar_lea.vmem %s676_s0, %s413_s20  ;;  %s234_s28 = scalar_lea.vmem %s679_s3, %s421_s25 }
  0x20   : > { %v246_v9 = vld [vmem:[%s224_s23] sm:$0x3] }
  0x23   : > { %v240_v3 = vld.sshfl [vmem:[#allocation1] sm:$0xff pattern:$0x75316420]  ;;  %v241_v4 = vld.sshfl [vmem:[#allocation1 + $0x8] sm:$0xff pattern:$0x75316420] }
  0x24   : > { %v244_v5 = vpack.c.bf16 %v240_v3, %v240_v3  ;;  %v245_v6 = vpack.c.bf16 %v241_v4, %v241_v4 }
  0x26   : > { %v259_v7 = vsel %vm257_vm0, %v244_v5, 0  ;;  %v262_v8 = vsel %vm257_vm0, %v245_v6, 0 }
  0x27   : > { %271 = vmatpush.bf16.msra.mxu0 %v259_v7  ;;  %284 = vmatpush.bf16.msra.mxu1 %v262_v8 }
  0x2a   : > { %416 = vmatmul.msk.bf16.vlgmr.msra.gmra.mxu0 %vm253_vm1, %v246_v9  ;;  %417 = vmatmul.msk.bf16.vlgmr.msra.gmra.mxu1 %vm253_vm1, %v246_v9 }
  0x8f   : > { %v251_v10 = vpop.permute.xlu0 %250 }
  0xa7   : > { %v273_v11 = vpop.f32.mrf.mxu0  ;;  %v286_v12 = vpop.f32.mrf.mxu1 }
  0xa8   : > { %v287_v13 = vadd.f32 %v286_v12, %v251_v10  ;;  %v274_v14 = vadd.f32 %v273_v11, %v251_v10 }
  0xaa   : > { %v292_v15 = vrot.slane %v287_v13, 4 }
  0xac   : > { %v294_v16 = vsel %vm293_vm2, %v274_v14, %v292_v15 }
  0xad   : > { %296 = vst [vmem:[%s234_s28] sm:$0x77] %v294_v16 }
  0xaf   : > { %v275_v17 = vpop.f32.mrf.mxu0  ;;  %v288_v18 = vpop.f32.mrf.mxu1 }
  0xb0 PF: > { %s16_s17 = sadd.s32 1, %s559_s17   ;;  %s682_s12 = smov %s543_s13 }
  0xb1   : > { %p13_p0 = scmp.ge.s32.totalorder %s16_s17, 4   ;;  %s683_s13 = smov %s547_s14 }
  0xb2   : > { %s684_s14 = smov %s631_s24  ;;  %s685_s15 = smov %s555_s16 }
  0xb3   : > { %s686_s16 = smov %s688_s19  ;;  %15 = sbr.rel (!%p13_p0) target bundleno = 4 (0x4), region = 75 }
  0xb8   :  { %327 = vsyncpa [#allocation3], 1 }
  0xb9   :  { %329 = vsyncpa [#allocation3 + $0x1], 1 }

</bundles_post_ra>
